<compile_context>
chip_gen: v7x
topology: tpu7x:2x2x1
jax: 0.10.0
libtpu: 0.0.40
codegen_flags: <defaults>
</compile_context>

<pallas_src>
import jax
import jax.numpy as jnp
from jax import lax
from jax.experimental import pallas as pl
from jax.experimental.pallas import tpu as pltpu


def _round_up(x, m):
    return ((x + m - 1) // m) * m


def policy_kernel(x_ref, w1_ref, b1_ref, w2_ref, b2_ref, w3_ref, b3_ref, out_ref):
    # x_ref: [tb, s_size] f32 (natural batch-major layout straight from HBM).
    # Cast to bf16 for the MXU; contract x's last dim against the weights' last
    # dim so the feature-major transpose is folded into the matmul.
    xb = x_ref[...].astype(jnp.bfloat16)
    dn = (((1,), (1,)), ((), ()))  # contract lhs dim 1 with rhs dim 1

    # fc1 + relu : (h1, s) x (tb, s) -> (h1, tb)
    h1 = lax.dot_general(w1_ref[...], xb, dn, preferred_element_type=jnp.float32)
    h1 = jnp.maximum(h1 + b1_ref[...], 0.0)

    # fc2 + relu : (h2, h1) @ (h1, tb) -> (h2, tb)
    h2 = jnp.dot(w2_ref[...], h1.astype(jnp.bfloat16),
                 preferred_element_type=jnp.float32)
    h2 = jnp.maximum(h2 + b2_ref[...], 0.0)

    # fc3 : (a_pad, h2) @ (h2, tb) -> (a_pad, tb); padded rows carry bias -1e30
    logits = jnp.dot(w3_ref[...], h2.astype(jnp.bfloat16),
                     preferred_element_type=jnp.float32)
    logits = logits + b3_ref[...]

    # softmax over features (PyTorch dim=1) == axis 0 in this layout.
    # Padded rows: exp(-1e30 - m) == 0, so they contribute nothing and output 0.
    m = jnp.max(logits, axis=0, keepdims=True)
    e = jnp.exp(logits - m)
    denom = jnp.sum(e, axis=0, keepdims=True)
    inv = pl.reciprocal(denom, approx=False)  # exact; tiny (1, tb) vector
    out_ref[...] = (e * inv).astype(out_ref.dtype)


def policy_forward(x, w1, b1, w2, b2, w3, b3, *, block_b=8192):
    """x: [B, s_size] float32. Weights in PyTorch layout: w [out, in], b [out].

    Returns softmax probabilities [B, a_size] (float32).
    """
    B, s_size = x.shape
    h1_size = w1.shape[0]
    h2_size = w2.shape[0]
    a_size = w3.shape[0]
    a_pad = max(8, _round_up(a_size, 8))  # full-sublane epilogue store

    # Batch tile: multiple of 128 (lane width), large to amortize per-step
    # overhead, but capped so the grid has >=2 steps when possible (v7x 2 TCs).
    # Keep tb <= 8192 by default so v5e's 16 MiB scoped-VMEM default is ample.
    bp = _round_up(B, 128)
    tb = min(_round_up(block_b, 128), bp)
    if tb >= bp and bp >= 256:
        tb = _round_up((bp + 1) // 2, 128)
    tb = max(tb, 128)
    grid = (pl.cdiv(B, tb),)

    # bf16 weights for the MXU; biases stay f32 column vectors.
    w1b = w1.astype(jnp.bfloat16)
    w2b = w2.astype(jnp.bfloat16)
    w3b = jnp.zeros((a_pad, h2_size), jnp.bfloat16).at[:a_size].set(
        w3.astype(jnp.bfloat16))
    b1c = b1.reshape(h1_size, 1).astype(jnp.float32)
    b2c = b2.reshape(h2_size, 1).astype(jnp.float32)
    # Padded fc3 rows get a huge-negative bias -> softmax prob exactly 0.
    b3c = jnp.full((a_pad, 1), -1e30, jnp.float32).at[:a_size, 0].set(
        b3.astype(jnp.float32))

    out = pl.pallas_call(
        policy_kernel,
        out_shape=jax.ShapeDtypeStruct((a_pad, B), jnp.float32),
        grid=grid,
        in_specs=[
            # x streams over the batch grid in its natural [B, s] layout;
            # the last (partial) tile is padded by Pallas block handling.
            pl.BlockSpec((tb, s_size), lambda i: (i, 0)),
            # weights / biases: one block, resident across all batch tiles
            pl.BlockSpec((h1_size, s_size), lambda i: (0, 0)),
            pl.BlockSpec((h1_size, 1), lambda i: (0, 0)),
            pl.BlockSpec((h2_size, h1_size), lambda i: (0, 0)),
            pl.BlockSpec((h2_size, 1), lambda i: (0, 0)),
            pl.BlockSpec((a_pad, h2_size), lambda i: (0, 0)),
            pl.BlockSpec((a_pad, 1), lambda i: (0, 0)),
        ],
        out_specs=pl.BlockSpec((a_pad, tb), lambda i: (0, i)),
        compiler_params=pltpu.CompilerParams(
            dimension_semantics=("parallel",),  # lets v7x split batch over 2 TCs
        ),
    )(x, w1b, b1c, w2b, b2c, w3b, b3c)

    # Drop the padded fc3 rows, back to [B, a_size].
    return jnp.transpose(out[:a_size, :])


def init_linear(key, in_features, out_features):
    # PyTorch nn.Linear default init: U(-1/sqrt(in), 1/sqrt(in)); weight [out, in].
    kw, kb = jax.random.split(key)
    bound = 1.0 / jnp.sqrt(jnp.float32(in_features))
    w = jax.random.uniform(kw, (out_features, in_features), jnp.float32, -bound, bound)
    b = jax.random.uniform(kb, (out_features,), jnp.float32, -bound, bound)
    return w, b


if __name__ == "__main__":
    # Module-consistent small sizes: s_size=8, h_size=32, a_size=2, batch=2
    s_size, h_size, a_size, batch = 8, 32, 2, 2

    key = jax.random.PRNGKey(0)
    kx, k1, k2, k3 = jax.random.split(key, 4)

    x = jax.random.normal(kx, (batch, s_size), jnp.float32)
    w1, b1 = init_linear(k1, s_size, h_size)
    w2, b2 = init_linear(k2, h_size, h_size * 2)
    w3, b3 = init_linear(k3, h_size * 2, a_size)

    probs = policy_forward(x, w1, b1, w2, b2, w3, b3)
    probs = jax.block_until_ready(probs)

    # plain-JAX f32 reference (PyTorch semantics)
    def ref(xx):
        r1 = jnp.maximum(xx @ w1.T + b1, 0.0)
        r2 = jnp.maximum(r1 @ w2.T + b2, 0.0)
        logits = r2 @ w3.T + b3
        return jax.nn.softmax(logits, axis=1)

    expected = ref(x)
    assert probs.shape == (batch, a_size)
    # bf16 MXU operands (f32 accumulate) -> slightly relaxed tolerance vs f32 ref
    assert jnp.allclose(probs, expected, atol=2e-2), "mismatch vs reference"
    # normalization is exact (exact reciprocal), probs sum to 1
    assert jnp.allclose(jnp.sum(probs, axis=1), 1.0, atol=1e-3)

    # TODO(synk): Policy.act()'s Categorical sampling / log_prob is host-side
    # control logic, not part of forward, and is left outside the kernel.
    print("KERNEL_OK")
</pallas_src>

<mosaic_0001>
module attributes {stable_mosaic.version = 11 : i64} {
  func.func @policy_kernel(%arg0: i32, %arg1: memref<128x8xf32, #tpu.memory_space<vmem>>, %arg2: memref<32x8xbf16, #tpu.memory_space<vmem>>, %arg3: memref<32x1xf32, #tpu.memory_space<vmem>>, %arg4: memref<64x32xbf16, #tpu.memory_space<vmem>>, %arg5: memref<64x1xf32, #tpu.memory_space<vmem>>, %arg6: memref<8x64xbf16, #tpu.memory_space<vmem>>, %arg7: memref<8x1xf32, #tpu.memory_space<vmem>>, %arg8: memref<8x128xf32, #tpu.memory_space<vmem>>) attributes {dimension_semantics = [#tpu.dimension_semantics<parallel>], iteration_bounds = array<i64: 1>, scalar_prefetch = 0 : i64, scratch_operands = 0 : i64, tpu.core_type = #tpu.core_type<tc>, window_params = [{transform_indices = @transform_0, window_bounds = array<i64: 128, 8>}, {pipeline_mode = #tpu.pipeline_mode<synchronous>, transform_indices = @transform_1, window_bounds = array<i64: 32, 8>}, {pipeline_mode = #tpu.pipeline_mode<synchronous>, transform_indices = @transform_2, window_bounds = array<i64: 32, 1>}, {pipeline_mode = #tpu.pipeline_mode<synchronous>, transform_indices = @transform_3, window_bounds = array<i64: 64, 32>}, {pipeline_mode = #tpu.pipeline_mode<synchronous>, transform_indices = @transform_4, window_bounds = array<i64: 64, 1>}, {pipeline_mode = #tpu.pipeline_mode<synchronous>, transform_indices = @transform_5, window_bounds = array<i64: 8, 64>}, {pipeline_mode = #tpu.pipeline_mode<synchronous>, transform_indices = @transform_6, window_bounds = array<i64: 8, 1>}, {transform_indices = @transform_7, window_bounds = array<i64: 8, 128>}]} {
    %c0 = arith.constant 0 : index
    %c0_0 = arith.constant 0 : index
    %0 = vector.load %arg1[%c0, %c0_0] : memref<128x8xf32, #tpu.memory_space<vmem>>, vector<128x8xf32>
    %1 = arith.truncf %0 : vector<128x8xf32> to vector<128x8xbf16>
    %c0_1 = arith.constant 0 : index
    %c0_2 = arith.constant 0 : index
    %2 = vector.load %arg2[%c0_1, %c0_2] : memref<32x8xbf16, #tpu.memory_space<vmem>>, vector<32x8xbf16>
    %cst = arith.constant dense<0.000000e+00> : vector<32x128xf32>
    %3 = tpu.matmul %2, %1, %cst {dimension_numbers = #tpu.dot_dimension_numbers<[1], [1], [0], [0], [0, 0, 1, 0], [], []>} : vector<32x8xbf16>, vector<128x8xbf16>, vector<32x128xf32> -> vector<32x128xf32>
    %c0_3 = arith.constant 0 : index
    %c0_4 = arith.constant 0 : index
    %4 = vector.load %arg3[%c0_3, %c0_4] : memref<32x1xf32, #tpu.memory_space<vmem>>, vector<32x1xf32>
    %5 = vector.broadcast %4 : vector<32x1xf32> to vector<32x128xf32>
    %6 = arith.addf %3, %5 : vector<32x128xf32>
    %cst_5 = arith.constant 0.000000e+00 : f32
    %7 = vector.broadcast %cst_5 : f32 to vector<32x128xf32>
    %8 = arith.maximumf %6, %7 : vector<32x128xf32>
    %c0_6 = arith.constant 0 : index
    %c0_7 = arith.constant 0 : index
    %9 = vector.load %arg4[%c0_6, %c0_7] : memref<64x32xbf16, #tpu.memory_space<vmem>>, vector<64x32xbf16>
    %10 = arith.truncf %8 : vector<32x128xf32> to vector<32x128xbf16>
    %cst_8 = arith.constant dense<0.000000e+00> : vector<64x128xf32>
    %11 = tpu.matmul %9, %10, %cst_8 {dimension_numbers = #tpu.dot_dimension_numbers<[1], [0], [0], [1], [0, 0, 1, 1], [], []>} : vector<64x32xbf16>, vector<32x128xbf16>, vector<64x128xf32> -> vector<64x128xf32>
    %c0_9 = arith.constant 0 : index
    %c0_10 = arith.constant 0 : index
    %12 = vector.load %arg5[%c0_9, %c0_10] : memref<64x1xf32, #tpu.memory_space<vmem>>, vector<64x1xf32>
    %13 = vector.broadcast %12 : vector<64x1xf32> to vector<64x128xf32>
    %14 = arith.addf %11, %13 : vector<64x128xf32>
    %cst_11 = arith.constant 0.000000e+00 : f32
    %15 = vector.broadcast %cst_11 : f32 to vector<64x128xf32>
    %16 = arith.maximumf %14, %15 : vector<64x128xf32>
    %c0_12 = arith.constant 0 : index
    %c0_13 = arith.constant 0 : index
    %17 = vector.load %arg6[%c0_12, %c0_13] : memref<8x64xbf16, #tpu.memory_space<vmem>>, vector<8x64xbf16>
    %18 = arith.truncf %16 : vector<64x128xf32> to vector<64x128xbf16>
    %cst_14 = arith.constant dense<0.000000e+00> : vector<8x128xf32>
    %19 = tpu.matmul %17, %18, %cst_14 {dimension_numbers = #tpu.dot_dimension_numbers<[1], [0], [0], [1], [0, 0, 1, 1], [], []>} : vector<8x64xbf16>, vector<64x128xbf16>, vector<8x128xf32> -> vector<8x128xf32>
    %c0_15 = arith.constant 0 : index
    %c0_16 = arith.constant 0 : index
    %20 = vector.load %arg7[%c0_15, %c0_16] : memref<8x1xf32, #tpu.memory_space<vmem>>, vector<8x1xf32>
    %21 = vector.broadcast %20 : vector<8x1xf32> to vector<8x128xf32>
    %22 = arith.addf %19, %21 : vector<8x128xf32>
    %cst_17 = arith.constant dense<0xFF800000> : vector<128xf32>
    %23 = vector.multi_reduction <maximumf>, %22, %cst_17 [0] : vector<8x128xf32> to vector<128xf32>
    %24 = vector.shape_cast %23 : vector<128xf32> to vector<1x128xf32>
    %25 = vector.broadcast %24 : vector<1x128xf32> to vector<8x128xf32>
    %26 = arith.subf %22, %25 : vector<8x128xf32>
    %27 = math.exp %26 : vector<8x128xf32>
    %cst_18 = arith.constant dense<0.000000e+00> : vector<128xf32>
    %28 = vector.multi_reduction <add>, %27, %cst_18 [0] : vector<8x128xf32> to vector<128xf32>
    %29 = vector.shape_cast %28 : vector<128xf32> to vector<1x128xf32>
    %30 = tpu.reciprocal %29 : vector<1x128xf32> -> vector<1x128xf32>
    %31 = vector.broadcast %30 : vector<1x128xf32> to vector<8x128xf32>
    %32 = arith.mulf %27, %31 : vector<8x128xf32>
    %c0_19 = arith.constant 0 : index
    %c0_20 = arith.constant 0 : index
    %33 = vector.load %arg8[%c0_19, %c0_20] : memref<8x128xf32, #tpu.memory_space<vmem>>, vector<8x128xf32>
    tpu.vector_store %arg8[%c0_19, %c0_20], %32 {strides = array<i32>} : memref<8x128xf32, #tpu.memory_space<vmem>>, vector<8x128xf32>,
    return
  }
  func.func @transform_0(%arg0: i32) -> (i32, i32) {
    %c0_i32 = arith.constant 0 : i32
    %c0_i32_0 = arith.constant 0 : i32
    return %arg0, %c0_i32 : i32, i32
  }
  func.func @transform_1(%arg0: i32) -> (i32, i32) {
    %c0_i32 = arith.constant 0 : i32
    %c0_i32_0 = arith.constant 0 : i32
    %c0_i32_1 = arith.constant 0 : i32
    return %c0_i32, %c0_i32_0 : i32, i32
  }
  func.func @transform_2(%arg0: i32) -> (i32, i32) {
    %c0_i32 = arith.constant 0 : i32
    %c0_i32_0 = arith.constant 0 : i32
    %c0_i32_1 = arith.constant 0 : i32
    return %c0_i32, %c0_i32_0 : i32, i32
  }
  func.func @transform_3(%arg0: i32) -> (i32, i32) {
    %c0_i32 = arith.constant 0 : i32
    %c0_i32_0 = arith.constant 0 : i32
    %c0_i32_1 = arith.constant 0 : i32
    return %c0_i32, %c0_i32_0 : i32, i32
  }
  func.func @transform_4(%arg0: i32) -> (i32, i32) {
    %c0_i32 = arith.constant 0 : i32
    %c0_i32_0 = arith.constant 0 : i32
    %c0_i32_1 = arith.constant 0 : i32
    return %c0_i32, %c0_i32_0 : i32, i32
  }
  func.func @transform_5(%arg0: i32) -> (i32, i32) {
    %c0_i32 = arith.constant 0 : i32
    %c0_i32_0 = arith.constant 0 : i32
    %c0_i32_1 = arith.constant 0 : i32
    return %c0_i32, %c0_i32_0 : i32, i32
  }
  func.func @transform_6(%arg0: i32) -> (i32, i32) {
    %c0_i32 = arith.constant 0 : i32
    %c0_i32_0 = arith.constant 0 : i32
    %c0_i32_1 = arith.constant 0 : i32
    return %c0_i32, %c0_i32_0 : i32, i32
  }
  func.func @transform_7(%arg0: i32) -> (i32, i32) {
    %c0_i32 = arith.constant 0 : i32
    %c0_i32_0 = arith.constant 0 : i32
    return %c0_i32, %arg0 : i32, i32
  }
}

</mosaic_0001>

<bundles_post_ra>
// kernel: tpu_custom_call.1
= control target key start
LH: loop header
LB: loop body
LE: loop exit
PB: predicated region body
PF: predicated region fallthrough
CT: control target
= control target key end

     0   :  { %vm89_vm0 = vcmask 64512   ;;  %v515_v3 = vmov 0   ;;  %vm251_vm1 = vcmask 261120   ;;  %vm517_vm2 = vmmov 0   ;;  %s691_s0 = inlined_call_operand.vmem [shape: f32[2,8], index: 0, kind: input, shape index: {}]   ;;  %s692_s1 = inlined_call_operand.vmem [shape: bf16[32,8], index: 1, kind: input, shape index: {}]   ;;  %s693_s2 = inlined_call_operand.vmem [shape: f32[32,1], index: 2, kind: input, shape index: {}]   ;;  %s694_s4 = inlined_call_operand.vmem [shape: f32[64,1], index: 4, kind: input, shape index: {}]   ;;  %s695_s6 = inlined_call_operand.vmem [shape: f32[8,1], index: 6, kind: input, shape index: {}]   ;;  %s696_s3 = inlined_call_operand.vmem [shape: bf16[64,32], index: 3, kind: input, shape index: {}]   ;;  %s697_s5 = inlined_call_operand.vmem [shape: bf16[8,64], index: 5, kind: input, shape index: {}]   ;;  %s698_s7 = inlined_call_operand.vmem [shape: f32[8,2], index: 7, kind: output, shape index: {}]  }
   0x1   :  { %v27_v0 = vld [vmem:[%s691_s0] sm:$0xff]  ;;  %v28_v1 = vld [vmem:[%s691_s0 + $0x8] sm:$0xff]  ;;  %v29_v2 = vld [vmem:[%s691_s0 + $0x10] sm:$0xff]  ;;  %503 = vset.pattern.permute.xlu0 %v515_v3  ;;  %504 = vset.pattern.permute.xlu1 %v515_v3  ;;  %vm348_vm3 = vcmask 523264  }
   0x2   :  { %v43_v4 = vpack.c.bf16 %v28_v1, %v27_v0  ;;  %v30_v5 = vld [vmem:[%s691_s0 + $0x18] sm:$0xff]  ;;  %v31_v8 = vld [vmem:[%s691_s0 + $0x20] sm:$0xff]  ;;  %v32_v9 = vld [vmem:[%s691_s0 + $0x28] sm:$0xff] }
   0x3   :  { %v44_v6 = vpack.c.bf16 %v30_v5, %v29_v2  ;;  %v505_v10 = vld [vmem:[%s692_s1] sm:$0xff]   ;;  %v57_v12 = vld [vmem:[%s693_s2 + $0x10] sm:$0xff]  ;;  %v45_v14 = vpack.c.bf16 %v32_v9, %v31_v8  ;;  %v56_v15 = vld [vmem:[%s693_s2 + $0x8] sm:$0xff] }
   0x4   :  { %492 = vmatprep.subr.msk.bf16.mxu0 %vm89_vm0, %v43_v4  ;;  %v97_v7 = vsel %vm89_vm0, %v43_v4, 0  ;;  %v55_v11 = vld [vmem:[%s693_s2] sm:$0xff]  ;;  %464 = vmatprep.mubr.msk.bf16.mxu0 %vm89_vm0, %v505_v10  ;;  %v58_v16 = vld [vmem:[%s693_s2 + $0x18] sm:$0xff]  ;;  %v33_v18 = vld [vmem:[%s691_s0 + $0x30] sm:$0xff] }
   0x5   :  { %449 = vmatpush3.bf16.xpose.msra.mxu0 %v97_v7  ;;  %61 = vperm.xlu0 %503, %v55_v11   ;;  %v100_v13 = vsel %vm89_vm0, %v44_v6, 0  ;;  %v183_v17 = vld [vmem:[%s694_s4] sm:$0xff]  ;;  %v34_v19 = vld [vmem:[%s691_s0 + $0x38] sm:$0xff]  ;;  %v184_v20 = vld [vmem:[%s694_s4 + $0x8] sm:$0xff]  ;;  %v103_v21 = vsel %vm89_vm0, %v45_v14, 0 }
   0x6   :  { %493 = vmatprep.subr.msk.bf16.mxu0 %vm89_vm0, %v44_v6  ;;  %71 = vperm.xlu1 %504, %v57_v12   ;;  %v46_v22 = vpack.c.bf16 %v34_v19, %v33_v18  ;;  %v185_v23 = vld [vmem:[%s694_s4 + $0x10] sm:$0xff]  ;;  %v186_v24 = vld [vmem:[%s694_s4 + $0x18] sm:$0xff]  ;;  %v187_v25 = vld [vmem:[%s694_s4 + $0x20] sm:$0xff]  ;;  %v516_v6 = vmov 0.0  }
   0x7   :  { %v35_v26 = vld [vmem:[%s691_s0 + $0x40] sm:$0xff]  ;;  %v36_v27 = vld [vmem:[%s691_s0 + $0x48] sm:$0xff]  ;;  %v189_v31 = vld [vmem:[%s694_s4 + $0x30] sm:$0xff] }
   0x8   :  { %v188_v28 = vld [vmem:[%s694_s4 + $0x28] sm:$0xff]  ;;  %v106_v29 = vsel %vm89_vm0, %v46_v22, 0  ;;  %v47_v30 = vpack.c.bf16 %v36_v27, %v35_v26  ;;  %v190_v32 = vld [vmem:[%s694_s4 + $0x38] sm:$0xff]  ;;  %v342_v33 = vld [vmem:[%s695_s6] sm:$0xff] }
   0x9   :  { %66 = vperm.xlu0 %503, %v56_v15   ;;  %v37_v34 = vld [vmem:[%s691_s0 + $0x50] sm:$0xff]  ;;  %v38_v35 = vld [vmem:[%s691_s0 + $0x58] sm:$0xff]  ;;  %v39_v38 = vld [vmem:[%s691_s0 + $0x60] sm:$0xff] }
   0xa   :  { %76 = vperm.xlu1 %504, %v58_v16   ;;  %v109_v36 = vsel %vm89_vm0, %v47_v30, 0  ;;  %v48_v37 = vpack.c.bf16 %v38_v35, %v37_v34  ;;  %v40_v39 = vld [vmem:[%s691_s0 + $0x68] sm:$0xff]  ;;  %v41_v42 = vld [vmem:[%s691_s0 + $0x70] sm:$0xff]  ;;  %v42_v43 = vld [vmem:[%s691_s0 + $0x78] sm:$0xff] }
   0xb   :  { %v49_v41 = vpack.c.bf16 %v40_v39, %v39_v38  ;;  %v50_v45 = vpack.c.bf16 %v42_v43, %v41_v42  ;;  %v506_v47 = vld [vmem:[%s692_s1 + $0x8] sm:$0xff]   ;;  %v507_v48 = vld [vmem:[%s696_s3] sm:$0xff]   ;;  %v509_v4 = vld [vmem:[%s696_s3 + $0x10] sm:$0xff]  }
   0xc   :  { %v112_v40 = vsel %vm89_vm0, %v48_v37, 0  ;;  %472 = vmatprep.mubr.msk.bf16.mxu1 %vm251_vm1, %v507_v48  ;;  %v508_v3 = vld [vmem:[%s696_s3 + $0x8] sm:$0xff]   ;;  %v510_v5 = vld [vmem:[%s696_s3 + $0x18] sm:$0xff]   ;;  %v337_v43 = vld [vmem:[%s697_s5] sm:$0xf] }
   0xd   :  { %451 = vmatpush3.bf16.xpose.msra.mxu0 %v100_v13  ;;  %193 = vperm.xlu0 %503, %v183_v17   ;;  %v115_v44 = vsel %vm89_vm0, %v49_v41, 0  ;;  %v118_v46 = vsel %vm89_vm0, %v50_v45, 0 }
   0xe   :  { %494 = vmatprep.subr.msk.bf16.mxu0 %vm89_vm0, %v45_v14  ;;  %198 = vperm.xlu1 %504, %v184_v20  }
  0x11   :  { %203 = vperm.xlu0 %503, %v185_v23  }
  0x12   :  { %208 = vperm.xlu1 %504, %v186_v24  }
  0x15   :  { %453 = vmatpush3.bf16.xpose.msra.mxu0 %v103_v21  ;;  %213 = vperm.xlu0 %503, %v187_v25  }
  0x16   :  { %495 = vmatprep.subr.msk.bf16.mxu0 %vm89_vm0, %v46_v22  ;;  %218 = vperm.xlu1 %504, %v188_v28  }
  0x19   :  { %223 = vperm.xlu0 %503, %v189_v31  }
  0x1a   :  { %228 = vperm.xlu1 %504, %v190_v32  }
  0x1d   :  { %455 = vmatpush3.bf16.xpose.msra.mxu0 %v106_v29  ;;  %345 = vperm.xlu0 %503, %v342_v33  }
  0x1e   :  { %496 = vmatprep.subr.msk.bf16.mxu0 %vm89_vm0, %v47_v30 }
  0x25   :  { %457 = vmatpush3.bf16.xpose.msra.mxu0 %v109_v36 }
  0x26   :  { %497 = vmatprep.subr.msk.bf16.mxu0 %vm89_vm0, %v48_v37 }
  0x2d   :  { %459 = vmatpush3.bf16.xpose.msra.mxu0 %v112_v40 }
  0x2e   :  { %498 = vmatprep.subr.msk.bf16.mxu0 %vm89_vm0, %v49_v41 }
  0x35   :  { %461 = vmatpush3.bf16.xpose.msra.mxu0 %v115_v44 }
  0x36   :  { %499 = vmatprep.subr.msk.bf16.mxu0 %vm89_vm0, %v50_v45 }
  0x3d   :  { %463 = vmatpush3.bf16.xpose.msra.mxu0 %v118_v46 }
  0x44   :  { %465 = vmatmul.mubr.msk.bf16.vlgmr.msra.gmra.mrb[0].mxu0 %vm89_vm0, %v506_v47 }
  0x84   :  { %v62_v50 = vpop.permute.xlu0 %61 }
  0x85   :  { %v72_v49 = vpop.permute.xlu1 %71 }
  0x88   :  { %v67_v57 = vpop.permute.xlu0 %66 }
  0x89   :  { %v77_v54 = vpop.permute.xlu1 %76 }
  0x8c   :  { %v194_v7 = vpop.permute.xlu0 %193 }
  0x8d   :  { %v199_v8 = vpop.permute.xlu1 %198 }
  0x90   :  { %v204_v9 = vpop.permute.xlu0 %203 }
  0x91   :  { %v209_v10 = vpop.permute.xlu1 %208 }
  0x94   :  { %v214_v14 = vpop.permute.xlu0 %213 }
  0x95   :  { %v219_v19 = vpop.permute.xlu1 %218 }
  0x98   :  { %v224_v26 = vpop.permute.xlu0 %223 }
  0x99   :  { %v229_v31 = vpop.permute.xlu1 %228 }
  0x9c   :  { %v346_v44 = vpop.permute.xlu0 %345 }
 0x117   :  { %v466_v51 = vpop.f32.mrb[0].mxu0 }
 0x118   :  { %v163_v52 = vadd.f32 %v466_v51, %v72_v49  ;;  %v154_v53 = vpop.f32.mrb[1].mxu0 }
 0x119   :  { %v155_v55 = vadd.f32 %v154_v53, %v62_v50  ;;  %v467_v56 = vpop.f32.mrb[2].mxu0 }
 0x11a   :  { %v166_v58 = vadd.f32 %v467_v56, %v77_v54  ;;  %v157_v59 = vpop.f32.mrb[3].mxu0  ;;  %v171_v61 = vmax.f32 %v163_v52, 0.0 }
 0x11b   :  { %v158_v60 = vadd.f32 %v157_v59, %v67_v57  ;;  %v169_v63 = vmax.f32 %v155_v55, 0.0 }
 0x11c   :  { %v172_v62 = vmax.f32 %v166_v58, 0.0 }
 0x11d   :  { %v170_v0 = vmax.f32 %v158_v60, 0.0 }
 0x11e   :  { %v182_v1 = vpack.c.bf16 %v172_v62, %v171_v61 }
 0x11f   :  { %v181_v2 = vpack.c.bf16 %v170_v0, %v169_v63 }
 0x121   :  { %468 = vmatprep.subr.bf16.mxu1 %v181_v2 }
 0x122   :  { %469 = vmatpush3.bf16.msra.mxu1 %v181_v2 }
 0x123   :  { %470 = vmatprep.subr.bf16.mxu1 %v182_v1 }
 0x126   :  { %471 = vmatpush3.bf16.msra.mxu1 %v182_v1 }
 0x127   :  { %480 = vmatprep.subr.bf16.mxu1 %v516_v6 }
 0x129   :  { %473 = vmatmul.mubr.msk.bf16.vlgmr.msra.gmra.mrb[0].mxu1 %vm251_vm1, %v508_v3 }
 0x12a   :  { %476 = vmatprep.mubr.msk.bf16.mxu1 %vm251_vm1, %v509_v4 }
 0x131   :  { %477 = vmatmul.mubr.msk.bf16.gmra.mrb[4].mxu1 %vm251_vm1, %v510_v5 }
 0x132   :  { %488 = vmatprep.mubr.msk.bf16.mxu1 %vm517_vm2, %v516_v6 }
 0x1fc   :  { %v474_v11 = vpop.f32.mrb[0].mxu1 }
 0x1fd   :  { %v307_v12 = vadd.f32 %v474_v11, %v204_v9  ;;  %v298_v13 = vpop.f32.mrb[1].mxu1 }
 0x1fe   :  { %v299_v15 = vadd.f32 %v298_v13, %v194_v7  ;;  %v475_v16 = vpop.f32.mrb[2].mxu1 }
 0x1ff   :  { %v310_v17 = vadd.f32 %v475_v16, %v209_v10  ;;  %v301_v18 = vpop.f32.mrb[3].mxu1  ;;  %v331_v21 = vmax.f32 %v307_v12, 0.0 }
 0x200   :  { %v302_v20 = vadd.f32 %v301_v18, %v199_v8  ;;  %v329_v23 = vmax.f32 %v299_v15, 0.0 }
 0x201   :  { %v332_v22 = vmax.f32 %v310_v17, 0.0 }
 0x202   :  { %v330_v24 = vmax.f32 %v302_v20, 0.0 }
 0x203   :  { %v339_v25 = vpack.c.bf16 %v332_v22, %v331_v21 }
 0x204   :  { %v338_v27 = vpack.c.bf16 %v330_v24, %v329_v23  ;;  %v478_v28 = vpop.f32.mrb[4].mxu1 }
 0x205   :  { %v323_v29 = vadd.f32 %v478_v28, %v224_v26  ;;  %v314_v30 = vpop.f32.mrb[5].mxu1 }
 0x206   :  { %v315_v32 = vadd.f32 %v314_v30, %v214_v14  ;;  %v479_v33 = vpop.f32.mrb[6].mxu1  ;;  %481 = vmatpush3.bf16.msra.mxu1 %v338_v27 }
 0x207   :  { %v326_v34 = vadd.f32 %v479_v33, %v229_v31  ;;  %v317_v35 = vpop.f32.mrb[7].mxu1  ;;  %482 = vmatprep.subr.bf16.mxu1 %v516_v6  ;;  %v335_v37 = vmax.f32 %v323_v29, 0.0 }
 0x208   :  { %v318_v36 = vadd.f32 %v317_v35, %v219_v19  ;;  %v333_v39 = vmax.f32 %v315_v32, 0.0 }
 0x209   :  { %v336_v38 = vmax.f32 %v326_v34, 0.0 }
 0x20a   :  { %v334_v40 = vmax.f32 %v318_v36, 0.0  ;;  %483 = vmatpush3.bf16.msra.mxu1 %v339_v25 }
 0x20b   :  { %v341_v41 = vpack.c.bf16 %v336_v38, %v335_v37  ;;  %484 = vmatprep.subr.bf16.mxu1 %v516_v6 }
 0x20c   :  { %v340_v42 = vpack.c.bf16 %v334_v40, %v333_v39 }
 0x20e   :  { %485 = vmatpush3.bf16.msra.mxu1 %v340_v42 }
 0x20f   :  { %486 = vmatprep.subr.bf16.mxu1 %v516_v6 }
 0x212   :  { %487 = vmatpush3.bf16.msra.mxu1 %v341_v41 }
 0x215   :  { %489 = vmatmul.mubr.msk.bf16.vlgmr.msra.gmra.mrb[8].mxu1 %vm348_vm3, %v337_v43 }
 0x2e8   :  { %v386_v45 = vpop.f32.mrb[8].mxu1 }
 0x2e9   :  { %v387_v46 = vadd.f32 %v386_v45, %v346_v44  ;;  %v490_v47 = vpop.f32.mrb[9].mxu1 }
 0x2ea   :  { %v389_v48 = vpop.f32.mrb[10].mxu1 }
 0x2eb   :  { %v392_v49 = vrot.slane %v387_v46, 4  ;;  %v491_v50 = vpop.f32.mrb[11].mxu1 }
 0x2ed   :  { %v393_v51 = vmax.f32 %v387_v46, %v392_v49 }
 0x2ef   :  { %v394_v52 = vrot.slane %v393_v51, 2 }
 0x2f1   :  { %v395_v53 = vmax.f32 %v393_v51, %v394_v52 }
 0x2f3   :  { %v396_v54 = vrot.slane %v395_v53, 1 }
 0x2f5   :  { %v397_v55 = vmax.f32 %v395_v53, %v396_v54 }
 0x2f7   :  { %v398_v56 = vsub.f32 %v387_v46, %v397_v55 }
 0x2f9   :  { %v399_v57 = vmul.f32 1.442695, %v398_v56 }
 0x2fb   :  { %511 = vpow2.f32 %v399_v57 }
 0x305   :  { %v512_v58 = vpop.eup %511 }
 0x306   :  { %v401_v59 = vrot.slane %v512_v58, 4 }
 0x308   :  { %v402_v60 = vadd.f32 %v512_v58, %v401_v59 }
 0x30a   :  { %v403_v61 = vrot.slane %v402_v60, 2 }
 0x30c   :  { %v404_v62 = vadd.f32 %v403_v61, %v402_v60 }
 0x30e   :  { %v405_v63 = vrot.slane %v404_v62, 1 }
 0x310   :  { %v406_v0 = vadd.f32 %v405_v63, %v404_v62 }
 0x312   :  { %513 = vrcp.f32 %v406_v0 }
 0x31c   :  { %v514_v1 = vpop.eup %513 }
 0x31d   :  { %v408_v2 = vmul.f32 %v514_v1, %v512_v58 }
 0x31f   :  { %409 = vst [vmem:[%s698_s7] sm:$0xff] %v408_v2 }

</bundles_post_ra>
